<compile_context>
chip_gen: v5e
topology: v5e:2x2
jax: 0.10.0
libtpu: 0.0.40
codegen_flags: <defaults>
</compile_context>

<pallas_src>
import functools

import jax
import jax.numpy as jnp
from jax.experimental import pallas as pl
from jax.experimental.pallas import tpu as pltpu


# ---------------------------------------------------------------------------
# Polyphase plan: for each output residue r (t = m*stride + r), the list of
# (tap j, time shift c) such that  out[:, :, t] += w[:, :, j]^T x[:, :, m + c]
# (contributions with m + c outside [0, T) are zero -> handled by the halo).
# ---------------------------------------------------------------------------
def _polyphase_plan(kernel_size, stride, padding, t_in, t_out):
    m_out = -(-t_out // stride)                       # ceil(t_out / stride)
    plan, c_min, c_max = [], 0, 0
    for r in range(stride):
        rr = (r + padding) % stride
        d = (r + padding) // stride
        taps = []
        j, u = rr, 0
        while j < kernel_size:
            c = d - u
            taps.append((j, c))
            c_min = min(c_min, c)
            c_max = max(c_max, c)
            j += stride
            u += 1
        plan.append(taps)
    pad_l = max(0, -c_min)
    pad_r = max(0, c_max + m_out - t_in)
    return plan, pad_l, pad_r, m_out, c_max


def _vmem_capacity_bytes(default=64 * 1024 * 1024):
    """Generation-aware VMEM capacity (falls back to a conservative 64 MiB)."""
    get_info = getattr(pltpu, "get_tpu_info", None)
    if get_info is None:
        return default
    try:
        return int(getattr(get_info(), "vmem_capacity_bytes", default))
    except Exception:
        return default


def _pick_batch_block(n, per_batch_bytes, vmem_budget):
    """Largest batch block that fits the (double-buffered) VMEM budget.
    No forced grid >= 2: on 1-TC chips one big step is best."""
    cap = max(1, int(vmem_budget) // max(int(per_batch_bytes), 1))
    return max(1, min(n, cap))


# ---------------------------------------------------------------------------
# Kernel: one grid step = `nb` batch elements, batch folded into lanes.
# ---------------------------------------------------------------------------
def _conv_t_kernel(x_ref, w_ref, b_ref, out_ref, rhs_ref, *, shifts):
    """
    x_ref   : (Cin, L_in)                 operand dtype; L_in = nb*P + slack
    w_ref   : (stride, Cout, taps*Cin)    per-phase stacked weights
    b_ref   : (Cout, 1)                   f32 bias
    out_ref : (stride, Cout, L)           f32, L = nb*P (phase-major, lane-dense)
    rhs_ref : (taps*Cin, L)               VMEM scratch for the stacked RHS
    shifts  : static tuple per phase of static lane shifts (one per tap slot)
    """
    cin = x_ref.shape[0]
    cout = out_ref.shape[1]
    l_out = out_ref.shape[2]

    # Bias broadcast hoisted once per grid step (JAX does not CSE it).
    bias = jnp.broadcast_to(b_ref[...], (cout, l_out))

    for r, s_list in enumerate(shifts):                 # static: stride phases
        # Stack the shifted input slabs along sublanes -> single deep matmul.
        for t, s in enumerate(s_list):                  # static: tap slots
            rhs_ref[t * cin:(t + 1) * cin, :] = x_ref[:, s:s + l_out]
        acc = jnp.dot(w_ref[r], rhs_ref[...],
                      preferred_element_type=jnp.float32)        # (Cout, L)
        out_ref[r, :, :] = (acc + bias).astype(out_ref.dtype)    # dense store


# ---------------------------------------------------------------------------
# Wrapper: replicates CustomConv1DTranspose.forward (no activation applied).
# ---------------------------------------------------------------------------
def custom_conv1d_transpose(x, weight, bias, *, stride=1, padding=0,
                            mxu_dtype=jnp.bfloat16, interpret=False):
    """x: (B, S, Cin, T) f32.  weight: (Cin, Cout, K) (PyTorch ConvTranspose1d
    layout).  bias: (Cout,).  Returns (B, S, Cout, T_out) f32,
    T_out = (T - 1) * stride - 2 * padding + K."""
    B, S, cin, T = x.shape
    cin_w, cout, K = weight.shape
    assert cin_w == cin
    t_out = (T - 1) * stride - 2 * padding + K
    assert t_out >= 1, "invalid conv-transpose geometry"

    N = B * S
    plan, pad_l, pad_r, M, c_max = _polyphase_plan(K, stride, padding, T, t_out)
    P = pad_l + T + pad_r                       # per-batch lane period
    taps_max = max(1, max(len(t) for t in plan))
    s_max = pad_l + c_max                       # largest static lane shift used

    in_b = jnp.dtype(mxu_dtype).itemsize
    per_batch = (2 * cin * P * in_b             # input block, double-buffered
                 + 2 * stride * cout * P * 4    # output block, double-buffered
                 + taps_max * cin * P * in_b)   # RHS scratch, single-buffered
    vmem_cap = _vmem_capacity_bytes()
    nb = _pick_batch_block(N, per_batch, vmem_budget=vmem_cap // 4)
    G = -(-N // nb)
    N_pad = G * nb
    L = nb * P                                  # output lane width per step
    L_in = L + s_max                            # + slack lanes for tap shifts

    # ---- wrapper-side layout plumbing (tiny vs. the output) ----------------
    xf = x.reshape(N, cin, T)
    if N_pad != N:
        xf = jnp.concatenate(
            [xf, jnp.zeros((N_pad - N, cin, T), xf.dtype)], axis=0)
    xp = jnp.pad(xf, ((0, 0), (0, 0), (pad_l, pad_r)))          # (Npad,Cin,P)
    xp = xp.reshape(G, nb, cin, P).transpose(0, 2, 1, 3).reshape(G, cin, L)
    if s_max:
        xp = jnp.pad(xp, ((0, 0), (0, 0), (0, s_max)))          # (G,Cin,L_in)
    xp = xp.astype(mxu_dtype)

    # Per-phase stacked weights (Cout, taps_max*Cin); ragged phases are padded
    # with zero weights (their slab slot reads shift pad_l, contributes zero).
    shifts, w_rows = [], []
    for taps in plan:
        cols, s_list = [], []
        for (j, c) in taps:
            cols.append(jnp.transpose(weight[:, :, j]))         # (Cout, Cin)
            s_list.append(pad_l + c)
        for _ in range(taps_max - len(taps)):
            cols.append(jnp.zeros((cout, cin), weight.dtype))
            s_list.append(pad_l)
        w_rows.append(jnp.concatenate(cols, axis=1))
        shifts.append(tuple(s_list))
    w_stack = jnp.stack(w_rows, axis=0).astype(mxu_dtype)  # (stride,Cout,tc*Cin)
    b2d = bias.reshape(cout, 1).astype(jnp.float32)
    shifts = tuple(shifts)

    need = nb * per_batch + stride * cout * taps_max * cin * 4 + (1 << 20)
    vmem_limit = int(min(0.9 * vmem_cap, max(32 << 20, 2 * need)))

    kern = functools.partial(_conv_t_kernel, shifts=shifts)

    out_k = pl.pallas_call(
        kern,
        out_shape=jax.ShapeDtypeStruct((G, stride, cout, L), jnp.float32),
        grid_spec=pltpu.PrefetchScalarGridSpec(
            num_scalar_prefetch=0,
            grid=(G,),
            in_specs=[
                pl.BlockSpec((None, cin, L_in), lambda g: (g, 0, 0)),
                pl.BlockSpec((stride, cout, taps_max * cin),
                             lambda g: (0, 0, 0)),
                pl.BlockSpec((cout, 1), lambda g: (0, 0)),
            ],
            out_specs=pl.BlockSpec((None, stride, cout, L),
                                   lambda g: (g, 0, 0, 0)),
            scratch_shapes=[pltpu.VMEM((taps_max * cin, L), mxu_dtype)],
        ),
        compiler_params=pltpu.CompilerParams(
            dimension_semantics=("parallel",),
            vmem_limit_bytes=vmem_limit,
        ),
        interpret=interpret,
    )(xp, w_stack, b2d)

    # Single XLA output pass: un-fold batch from lanes, drop the junk columns
    # (period P -> M), interleave the stride phases onto time, crop to T_out.
    o = out_k.reshape(G, stride, cout, nb, P)[..., :M]
    o = o.transpose(0, 3, 2, 4, 1).reshape(G, nb, cout, M * stride)
    o = o[..., :t_out].reshape(N_pad, cout, t_out)[:N]
    return o.reshape(B, S, cout, t_out)


# ---------------------------------------------------------------------------
# Pure-JAX reference replicating nn.ConvTranspose1d + the module's reshapes.
# ---------------------------------------------------------------------------
def custom_conv1d_transpose_ref(x, weight, bias, *, stride=1, padding=0):
    B, S, cin, T = x.shape
    cout, K = weight.shape[1], weight.shape[2]
    xf = x.reshape(B * S, cin, T)
    w_oih = jnp.transpose(jnp.flip(weight, axis=2), (1, 0, 2))   # (Cout,Cin,K)
    out = jax.lax.conv_general_dilated(
        xf, w_oih, window_strides=(1,),
        padding=[(K - 1 - padding, K - 1 - padding)],
        lhs_dilation=(stride,),
        dimension_numbers=("NCH", "OIH", "NCH"),
        precision=jax.lax.Precision.HIGHEST)
    out = out + bias[None, :, None]
    return out.reshape(B, S, cout, out.shape[-1])


if __name__ == "__main__":
    batch, signals, cin, T = 2, 4, 16, 16
    filters, ksize = 32, 3

    key = jax.random.PRNGKey(0)
    kx, kw, kb = jax.random.split(key, 3)
    x = jax.random.normal(kx, (batch, signals, cin, T), jnp.float32)
    weight = 0.2 * jax.random.normal(kw, (cin, filters, ksize), jnp.float32)
    bias = 0.1 * jax.random.normal(kb, (filters,), jnp.float32)

    for stride, padding in ((2, 1), (1, 1), (4, 0)):
        t_out = (T - 1) * stride - 2 * padding + ksize
        ref = custom_conv1d_transpose_ref(x, weight, bias,
                                          stride=stride, padding=padding)
        for mxu_dtype, tol in ((jnp.float32, 1e-3), (jnp.bfloat16, 2e-2)):
            out = custom_conv1d_transpose(x, weight, bias, stride=stride,
                                          padding=padding, mxu_dtype=mxu_dtype)
            out = jax.block_until_ready(out)
            assert out.shape == (batch, signals, filters, t_out), out.shape
            err = float(jnp.max(jnp.abs(out - ref)))
            assert jnp.allclose(out, ref, rtol=tol, atol=tol), (
                stride, padding, str(jnp.dtype(mxu_dtype)), err)

    print("KERNEL_OK")
</pallas_src>

<mosaic_0001>
module attributes {stable_mosaic.version = 11 : i64} {
  func.func @_conv_t_kernel(%arg0: i32, %arg1: memref<1x16x137xf32, #tpu.memory_space<vmem>>, %arg2: memref<2x32x32xf32, #tpu.memory_space<vmem>>, %arg3: memref<32x1xf32, #tpu.memory_space<vmem>>, %arg4: memref<1x2x32x136xf32, #tpu.memory_space<vmem>>, %arg5: memref<32x136xf32, #tpu.memory_space<vmem>>) attributes {dimension_semantics = [#tpu.dimension_semantics<parallel>], iteration_bounds = array<i64: 1>, scalar_prefetch = 0 : i64, scratch_operands = 1 : i64, tpu.core_type = #tpu.core_type<tc>, window_params = [{transform_indices = @transform_0, window_bounds = array<i64: 1, 16, 137>}, {pipeline_mode = #tpu.pipeline_mode<synchronous>, transform_indices = @transform_1, window_bounds = array<i64: 2, 32, 32>}, {pipeline_mode = #tpu.pipeline_mode<synchronous>, transform_indices = @transform_2, window_bounds = array<i64: 32, 1>}, {transform_indices = @transform_3, window_bounds = array<i64: 1, 2, 32, 136>}]} {
    %c0 = arith.constant 0 : index
    %c0_0 = arith.constant 0 : index
    %0 = vector.load %arg3[%c0, %c0_0] : memref<32x1xf32, #tpu.memory_space<vmem>>, vector<32x1xf32>
    %1 = vector.shape_cast %0 : vector<32x1xf32> to vector<32x1xf32>
    %2 = vector.broadcast %1 : vector<32x1xf32> to vector<32x136xf32>
    %c0_1 = arith.constant 0 : index
    %c0_2 = arith.constant 0 : index
    %c0_3 = arith.constant 0 : index
    %3 = vector.load %arg1[%c0_1, %c0_2, %c0_3] : memref<1x16x137xf32, #tpu.memory_space<vmem>>, vector<1x16x136xf32>
    %4 = vector.shape_cast %3 : vector<1x16x136xf32> to vector<16x136xf32>
    %c0_4 = arith.constant 0 : index
    %c0_5 = arith.constant 0 : index
    %5 = vector.load %arg5[%c0_4, %c0_5] : memref<32x136xf32, #tpu.memory_space<vmem>>, vector<16x136xf32>
    tpu.vector_store %arg5[%c0_4, %c0_5], %4 {strides = array<i32>} : memref<32x136xf32, #tpu.memory_space<vmem>>, vector<16x136xf32>,
    %c0_6 = arith.constant 0 : index
    %c0_7 = arith.constant 0 : index
    %c0_8 = arith.constant 0 : index
    %6 = vector.load %arg1[%c0_6, %c0_7, %c0_8] : memref<1x16x137xf32, #tpu.memory_space<vmem>>, vector<1x16x136xf32>
    %7 = vector.shape_cast %6 : vector<1x16x136xf32> to vector<16x136xf32>
    %c16 = arith.constant 16 : index
    %c0_9 = arith.constant 0 : index
    %8 = vector.load %arg5[%c16, %c0_9] : memref<32x136xf32, #tpu.memory_space<vmem>>, vector<16x136xf32>
    tpu.vector_store %arg5[%c16, %c0_9], %7 {strides = array<i32>} : memref<32x136xf32, #tpu.memory_space<vmem>>, vector<16x136xf32>,
    %c0_10 = arith.constant 0 : index
    %c0_11 = arith.constant 0 : index
    %c0_12 = arith.constant 0 : index
    %9 = vector.load %arg2[%c0_10, %c0_11, %c0_12] : memref<2x32x32xf32, #tpu.memory_space<vmem>>, vector<1x32x32xf32>
    %10 = vector.shape_cast %9 : vector<1x32x32xf32> to vector<32x32xf32>
    %c0_13 = arith.constant 0 : index
    %c0_14 = arith.constant 0 : index
    %11 = vector.load %arg5[%c0_13, %c0_14] : memref<32x136xf32, #tpu.memory_space<vmem>>, vector<32x136xf32>
    %cst = arith.constant dense<0.000000e+00> : vector<32x136xf32>
    %12 = tpu.matmul %10, %11, %cst {dimension_numbers = #tpu.dot_dimension_numbers<[1], [0], [0], [1], [0, 0, 1, 1], [], []>} : vector<32x32xf32>, vector<32x136xf32>, vector<32x136xf32> -> vector<32x136xf32>
    %13 = arith.addf %12, %2 : vector<32x136xf32>
    %c0_15 = arith.constant 0 : index
    %c0_16 = arith.constant 0 : index
    %c0_17 = arith.constant 0 : index
    %c0_18 = arith.constant 0 : index
    %14 = vector.load %arg4[%c0_15, %c0_16, %c0_17, %c0_18] : memref<1x2x32x136xf32, #tpu.memory_space<vmem>>, vector<1x1x32x136xf32>
    %15 = vector.shape_cast %14 : vector<1x1x32x136xf32> to vector<32x136xf32>
    %16 = vector.shape_cast %13 : vector<32x136xf32> to vector<1x1x32x136xf32>
    tpu.vector_store %arg4[%c0_15, %c0_16, %c0_17, %c0_18], %16 {strides = array<i32>} : memref<1x2x32x136xf32, #tpu.memory_space<vmem>>, vector<1x1x32x136xf32>,
    %c0_19 = arith.constant 0 : index
    %c0_20 = arith.constant 0 : index
    %c1 = arith.constant 1 : index
    %17 = vector.load %arg1[%c0_19, %c0_20, %c1] : memref<1x16x137xf32, #tpu.memory_space<vmem>>, vector<1x16x136xf32>
    %18 = vector.shape_cast %17 : vector<1x16x136xf32> to vector<16x136xf32>
    %c0_21 = arith.constant 0 : index
    %c0_22 = arith.constant 0 : index
    %19 = vector.load %arg5[%c0_21, %c0_22] : memref<32x136xf32, #tpu.memory_space<vmem>>, vector<16x136xf32>
    tpu.vector_store %arg5[%c0_21, %c0_22], %18 {strides = array<i32>} : memref<32x136xf32, #tpu.memory_space<vmem>>, vector<16x136xf32>,
    %c0_23 = arith.constant 0 : index
    %c0_24 = arith.constant 0 : index
    %c0_25 = arith.constant 0 : index
    %20 = vector.load %arg1[%c0_23, %c0_24, %c0_25] : memref<1x16x137xf32, #tpu.memory_space<vmem>>, vector<1x16x136xf32>
    %21 = vector.shape_cast %20 : vector<1x16x136xf32> to vector<16x136xf32>
    %c16_26 = arith.constant 16 : index
    %c0_27 = arith.constant 0 : index
    %22 = vector.load %arg5[%c16_26, %c0_27] : memref<32x136xf32, #tpu.memory_space<vmem>>, vector<16x136xf32>
    tpu.vector_store %arg5[%c16_26, %c0_27], %21 {strides = array<i32>} : memref<32x136xf32, #tpu.memory_space<vmem>>, vector<16x136xf32>,
    %c1_28 = arith.constant 1 : index
    %c0_29 = arith.constant 0 : index
    %c0_30 = arith.constant 0 : index
    %23 = vector.load %arg2[%c1_28, %c0_29, %c0_30] : memref<2x32x32xf32, #tpu.memory_space<vmem>>, vector<1x32x32xf32>
    %24 = vector.shape_cast %23 : vector<1x32x32xf32> to vector<32x32xf32>
    %c0_31 = arith.constant 0 : index
    %c0_32 = arith.constant 0 : index
    %25 = vector.load %arg5[%c0_31, %c0_32] : memref<32x136xf32, #tpu.memory_space<vmem>>, vector<32x136xf32>
    %cst_33 = arith.constant dense<0.000000e+00> : vector<32x136xf32>
    %26 = tpu.matmul %24, %25, %cst_33 {dimension_numbers = #tpu.dot_dimension_numbers<[1], [0], [0], [1], [0, 0, 1, 1], [], []>} : vector<32x32xf32>, vector<32x136xf32>, vector<32x136xf32> -> vector<32x136xf32>
    %27 = arith.addf %26, %2 : vector<32x136xf32>
    %c0_34 = arith.constant 0 : index
    %c1_35 = arith.constant 1 : index
    %c0_36 = arith.constant 0 : index
    %c0_37 = arith.constant 0 : index
    %28 = vector.load %arg4[%c0_34, %c1_35, %c0_36, %c0_37] : memref<1x2x32x136xf32, #tpu.memory_space<vmem>>, vector<1x1x32x136xf32>
    %29 = vector.shape_cast %28 : vector<1x1x32x136xf32> to vector<32x136xf32>
    %30 = vector.shape_cast %27 : vector<32x136xf32> to vector<1x1x32x136xf32>
    tpu.vector_store %arg4[%c0_34, %c1_35, %c0_36, %c0_37], %30 {strides = array<i32>} : memref<1x2x32x136xf32, #tpu.memory_space<vmem>>, vector<1x1x32x136xf32>,
    return
  }
  func.func @transform_0(%arg0: i32) -> (i32, i32, i32) {
    %c0_i32 = arith.constant 0 : i32
    %c0_i32_0 = arith.constant 0 : i32
    %c0_i32_1 = arith.constant 0 : i32
    return %arg0, %c0_i32, %c0_i32_0 : i32, i32, i32
  }
  func.func @transform_1(%arg0: i32) -> (i32, i32, i32) {
    %c0_i32 = arith.constant 0 : i32
    %c0_i32_0 = arith.constant 0 : i32
    %c0_i32_1 = arith.constant 0 : i32
    %c0_i32_2 = arith.constant 0 : i32
    return %c0_i32, %c0_i32_0, %c0_i32_1 : i32, i32, i32
  }
  func.func @transform_2(%arg0: i32) -> (i32, i32) {
    %c0_i32 = arith.constant 0 : i32
    %c0_i32_0 = arith.constant 0 : i32
    %c0_i32_1 = arith.constant 0 : i32
    return %c0_i32, %c0_i32_0 : i32, i32
  }
  func.func @transform_3(%arg0: i32) -> (i32, i32, i32, i32) {
    %c0_i32 = arith.constant 0 : i32
    %c0_i32_0 = arith.constant 0 : i32
    %c0_i32_1 = arith.constant 0 : i32
    %c0_i32_2 = arith.constant 0 : i32
    return %arg0, %c0_i32, %c0_i32_0, %c0_i32_1 : i32, i32, i32, i32
  }
}

</mosaic_0001>

<bundles_post_ra>
// kernel: tpu_custom_call.1
= control target key start
LH: loop header
LB: loop body
LE: loop exit
PB: predicated region body
PF: predicated region fallthrough
CT: control target
= control target key end

     0   :  { %8 = vsyncpa [#allocation4], 0  ;;  %s478_s0 = inlined_call_operand.vmem [shape: f32[1,16,137], index: 0, kind: input, shape index: {}]   ;;  %s479_s1 = inlined_call_operand.hbm [shape: f32[2,32,32], index: 1, kind: input, shape index: {}]   ;;  %s480_s2 = inlined_call_operand.vmem [shape: f32[32,1], index: 2, kind: input, shape index: {}]   ;;  %s481_s3 = inlined_call_operand.hbm [shape: f32[1,2,32,136], index: 3, kind: output, shape index: {}]  }
   0x1   :  { %9 = vsyncpa [#allocation5], 0  ;;  %s16_s14 = sshll.u32 %s479_s1, 4  ;;  %s388_s15 = smov [#allocation3]   ;;  %s17_s14 = int_to_ptr.hbm [resolvable:$true] %s16_s14 }
   0x2   :  { %s18_s16 = sshll.u32 %s388_s15, 4  ;;  %s389_s17 = smov 128   ;;  %s19_s16 = int_to_ptr.vmem [resolvable:$true] %s18_s16 }
   0x3   :  { %s390_s18 = smov 8  }
   0x4   :  { %24 = dma.hbm_to_vmem [thread:$0]  %s17_s14, 1024, %s19_s16, [#allocation4], %s389_s17, %s389_s17, %s390_s18  }
   0x5   :  { %384 = dma.done.wait [#allocation4], 1024  }
   0x6   :  { %385 = vsyncadd [#allocation4], 4294966272  ;;  %v165_v0 = vld [vmem:[%s478_s0 + $0x10] sm:$0xff]  ;;  %v163_v1 = vld [vmem:[%s478_s0] sm:$0xff]  ;;  %s391_s23 = smov 127   ;;  %vm60_vm0 = vcmask 64512  }
   0x7   :  { %175 = vrot.lane.b32.xlu0 %v165_v0, %s391_s23  ;;  %171 = vrot.lane.b32.xlu1 %v163_v1, %s391_s23  ;;  %v166_v2 = vld [vmem:[%s478_s0 + $0x18] sm:$0xff]  ;;  %v164_v3 = vld [vmem:[%s478_s0 + $0x8] sm:$0xff]  ;;  %vm84_vm1 = vcmask 261120   ;;  %v72_v10 = vld [vmem:[#allocation3] sm:$0xff]  ;;  %vm179_vm2 = vcmask 1039360   ;;  %v392_v23 = vmov 0  }
   0x8   :  { %235 = vmatpush.msra.mxu2 %v165_v0  ;;  %109 = vmatpush.msra.mxu0 %v165_v0  ;;  %63 = vst.msk [vmem:[#allocation2 + $0x18] sm:$0xff] %vm60_vm0, %v166_v2  ;;  %v73_v11 = vld [vmem:[#allocation3 + $0x8] sm:$0xff]  ;;  %v74_v14 = vld [vmem:[#allocation3 + $0x10] sm:$0xff]  ;;  %v199_v19 = vld [vmem:[#allocation3 + $0x20] sm:$0xff]  ;;  %s296_s10 = sshll.u32 %s481_s3, 4  ;;  %s394_s11 = smov 256   ;;  %s297_s10 = int_to_ptr.hbm [resolvable:$true] %s296_s10 }
   0x9   :  { %61 = vst.msk [vmem:[#allocation2 + $0x8] sm:$0xff] %vm60_vm0, %v164_v3  ;;  %v75_v20 = vld [vmem:[#allocation3 + $0x18] sm:$0xff]  ;;  %v33_v21 = vld [vmem:[%s480_s2 + $0x10] sm:$0xff]  ;;  %334 = vset.pattern.permute.xlu0 %v392_v23  ;;  %335 = vset.pattern.permute.xlu1 %v392_v23  ;;  %v31_v24 = vld [vmem:[%s480_s2] sm:$0xff]  ;;  %s395_s12 = smov 16  }
   0xa   :  { %236 = vmatpush.msra.mxu2 %v163_v1  ;;  %110 = vmatpush.msra.mxu0 %v163_v1  ;;  %71 = vst.msk [vmem:[#allocation2 + $0x38] sm:$0xff] %vm60_vm0, %v166_v2  ;;  %v34_v22 = vld [vmem:[%s480_s2 + $0x18] sm:$0xff]  ;;  %v200_v26 = vld [vmem:[#allocation3 + $0x28] sm:$0xff]  ;;  %v201_v29 = vld [vmem:[#allocation3 + $0x30] sm:$0xff] }
   0xb   :  { %69 = vst.msk [vmem:[#allocation2 + $0x28] sm:$0xff] %vm60_vm0, %v164_v3  ;;  %333 = vset.pattern.permute.xlu2 %v392_v23  ;;  %v32_v28 = vld [vmem:[%s480_s2 + $0x8] sm:$0xff]  ;;  %v202_v30 = vld [vmem:[#allocation3 + $0x38] sm:$0xff]  ;;  %s393_s2 = smov [#allocation6]  }
   0xc   :  { %111 = vmatpush.msra.mxu0 %v165_v0  ;;  %37 = vperm.xlu2 %333, %v31_v24   ;;  %s294_s7 = sshll.u32 %s393_s2, 4  ;;  %s295_s7 = int_to_ptr.vmem [resolvable:$true] %s294_s7 }
   0xe   :  { %112 = vmatpush.msra.mxu0 %v163_v1 }
   0xf   :  { %177 = vrot.lane.b32.xlu0 %v166_v2, %s391_s23  ;;  %173 = vrot.lane.b32.xlu1 %v164_v3, %s391_s23  ;;  %v79_v6 = vld [vmem:[#allocation2 + $0x18] sm:$0xff] }
  0x10   :  { %v77_v7 = vld [vmem:[#allocation2 + $0x8] sm:$0xff]  ;;  %309 = vmatmul.msk.f32.vlgmr.msra.gmra.mxu0 %vm84_vm1, %v72_v10 }
  0x11   :  { %v83_v4 = vld [vmem:[#allocation2 + $0x38] sm:$0xff] }
  0x12   :  { %197 = vst.msk [vmem:[#allocation2 + $0x38] sm:$0xff] %vm60_vm0, %v166_v2  ;;  %v81_v5 = vld [vmem:[#allocation2 + $0x28] sm:$0xff]  ;;  %138 = vmatpush.msra.mxu1 %v83_v4 }
  0x13   :  { %195 = vst.msk [vmem:[#allocation2 + $0x28] sm:$0xff] %vm60_vm0, %v164_v3 }
  0x14   :  { %139 = vmatpush.msra.mxu1 %v81_v5  ;;  %42 = vperm.xlu2 %333, %v32_v28  }
  0x16   :  { %140 = vmatpush.msra.mxu1 %v79_v6 }
  0x17   :  { %47 = vperm.xlu0 %334, %v33_v21   ;;  %52 = vperm.xlu1 %335, %v34_v22  }
  0x18   :  { %141 = vmatpush.msra.mxu1 %v77_v7  ;;  %310 = vmatmul.msk.f32.gmra.mxu0 %vm84_vm1, %v73_v11 }
  0x19   :  { %v210_v8 = vld [vmem:[#allocation2 + $0x38] sm:$0xff]  ;;  %313 = vmatmul.msk.f32.vlgmr.msra.gmra.mxu1 %vm84_vm1, %v72_v10 }
  0x1a   :  { %264 = vmatpush.msra.mxu3 %v210_v8  ;;  %v208_v9 = vld [vmem:[#allocation2 + $0x28] sm:$0xff] }
  0x1c   :  { %265 = vmatpush.msra.mxu3 %v208_v9 }
  0x20   :  { %311 = vmatmul.msk.f32.gmra.mxu0 %vm84_vm1, %v74_v14 }
  0x21   :  { %314 = vmatmul.msk.f32.gmra.mxu1 %vm84_vm1, %v73_v11 }
  0x28   :  { %312 = vmatmul.msk.f32.gmra.mxu0 %vm84_vm1, %v75_v20 }
  0x29   :  { %315 = vmatmul.msk.f32.gmra.mxu1 %vm84_vm1, %v74_v14 }
  0x31   :  { %316 = vmatmul.msk.f32.gmra.mxu1 %vm84_vm1, %v75_v20 }
  0x66   :  { %v38_v33 = vpop.permute.xlu2 %37 }
  0x6e   :  { %v43_v38 = vpop.permute.xlu2 %42 }
  0x79   :  { %v176_v12 = vpop.permute.xlu0 %175  ;;  %v172_v13 = vpop.permute.xlu1 %171 }
  0x81   :  { %v178_v15 = vpop.permute.xlu0 %177  ;;  %v174_v16 = vpop.permute.xlu1 %173 }
  0x82   :  { %v181_v17 = vsel %vm179_vm2, %v176_v12, %v178_v15  ;;  %189 = vst.msk [vmem:[#allocation2 + $0x18] sm:$0xff] %vm60_vm0, %v178_v15  ;;  %v180_v18 = vsel %vm179_vm2, %v172_v13, %v174_v16 }
  0x83   :  { %237 = vmatpush.msra.mxu2 %v181_v17  ;;  %187 = vst.msk [vmem:[#allocation2 + $0x8] sm:$0xff] %vm60_vm0, %v174_v16 }
  0x85   :  { %238 = vmatpush.msra.mxu2 %v180_v18 }
  0x86   :  { %317 = vmatmul.msk.f32.vlgmr.msra.gmra.mxu2 %vm84_vm1, %v199_v19 }
  0x89   :  { %v206_v25 = vld [vmem:[#allocation2 + $0x18] sm:$0xff]  ;;  %v48_v43 = vpop.permute.xlu0 %47  ;;  %v53_v49 = vpop.permute.xlu1 %52 }
  0x8a   :  { %266 = vmatpush.msra.mxu3 %v206_v25  ;;  %v204_v27 = vld [vmem:[#allocation2 + $0x8] sm:$0xff] }
  0x8c   :  { %267 = vmatpush.msra.mxu3 %v204_v27 }
  0x8d   :  { %321 = vmatmul.msk.f32.vlgmr.msra.gmra.mxu3 %vm84_vm1, %v199_v19  ;;  %v114_v31 = vpop.f32.mrf.mxu0 }
  0x8e   :  { %318 = vmatmul.msk.f32.gmra.mxu2 %vm84_vm1, %v200_v26  ;;  %v115_v34 = vadd.f32 %v114_v31, %v38_v33 }
  0x90   :  { %155 = vst [vmem:[#allocation6] sm:$0xff] %v115_v34 }
  0x95   :  { %322 = vmatmul.msk.f32.gmra.mxu3 %vm84_vm1, %v200_v26  ;;  %v117_v36 = vpop.f32.mrf.mxu0 }
  0x96   :  { %319 = vmatmul.msk.f32.gmra.mxu2 %vm84_vm1, %v201_v29  ;;  %v143_v32 = vpop.f32.mrf.mxu1  ;;  %v118_v39 = vadd.f32 %v117_v36, %v43_v38 }
  0x97   :  { %v144_v35 = vadd.f32 %v143_v32, %v38_v33 }
  0x98   :  { %157 = vst [vmem:[#allocation6 + $0x10] sm:$0xff] %v118_v39 }
  0x99   :  { %156 = vst.msk [vmem:[#allocation6 + $0x8] sm:$0xff] %vm60_vm0, %v144_v35 }
  0x9d   :  { %323 = vmatmul.msk.f32.gmra.mxu3 %vm84_vm1, %v201_v29  ;;  %v120_v41 = vpop.f32.mrf.mxu0 }
  0x9e   :  { %320 = vmatmul.msk.f32.gmra.mxu2 %vm84_vm1, %v202_v30  ;;  %v146_v37 = vpop.f32.mrf.mxu1  ;;  %v121_v44 = vadd.f32 %v120_v41, %v48_v43 }
  0x9f   :  { %v147_v40 = vadd.f32 %v146_v37, %v43_v38 }
  0xa0   :  { %159 = vst [vmem:[#allocation6 + $0x20] sm:$0xff] %v121_v44 }
  0xa1   :  { %158 = vst.msk [vmem:[#allocation6 + $0x18] sm:$0xff] %vm60_vm0, %v147_v40 }
  0xa5   :  { %324 = vmatmul.msk.f32.gmra.mxu3 %vm84_vm1, %v202_v30  ;;  %v123_v46 = vpop.f32.mrf.mxu0 }
  0xa6   :  { %v149_v42 = vpop.f32.mrf.mxu1  ;;  %v124_v51 = vadd.f32 %v123_v46, %v53_v49 }
  0xa7   :  { %v150_v45 = vadd.f32 %v149_v42, %v48_v43 }
  0xa8   :  { %161 = vst [vmem:[#allocation6 + $0x30] sm:$0xff] %v124_v51 }
  0xa9   :  { %160 = vst.msk [vmem:[#allocation6 + $0x28] sm:$0xff] %vm60_vm0, %v150_v45 }
  0xae   :  { %v152_v47 = vpop.f32.mrf.mxu1 }
  0xaf   :  { %v153_v52 = vadd.f32 %v152_v47, %v53_v49 }
  0xb1   :  { %162 = vst.msk [vmem:[#allocation6 + $0x38] sm:$0xff] %vm60_vm0, %v153_v52 }
 0x109   :  { %v240_v48 = vpop.f32.mrf.mxu2 }
 0x10a   :  { %v241_v50 = vadd.f32 %v240_v48, %v38_v33 }
 0x10c   :  { %282 = vst [vmem:[#allocation6 + $0x40] sm:$0xff] %v241_v50 }
 0x110   :  { %v269_v53 = vpop.f32.mrf.mxu3 }
 0x111   :  { %v243_v54 = vpop.f32.mrf.mxu2  ;;  %v270_v55 = vadd.f32 %v269_v53, %v38_v33 }
 0x112   :  { %v244_v56 = vadd.f32 %v243_v54, %v43_v38 }
 0x113   :  { %283 = vst.msk [vmem:[#allocation6 + $0x48] sm:$0xff] %vm60_vm0, %v270_v55 }
 0x114   :  { %284 = vst [vmem:[#allocation6 + $0x50] sm:$0xff] %v244_v56 }
 0x118   :  { %v272_v57 = vpop.f32.mrf.mxu3 }
 0x119   :  { %v246_v58 = vpop.f32.mrf.mxu2  ;;  %v273_v59 = vadd.f32 %v272_v57, %v43_v38 }
 0x11a   :  { %v247_v60 = vadd.f32 %v246_v58, %v48_v43 }
 0x11b   :  { %285 = vst.msk [vmem:[#allocation6 + $0x58] sm:$0xff] %vm60_vm0, %v273_v59 }
 0x11c   :  { %286 = vst [vmem:[#allocation6 + $0x60] sm:$0xff] %v247_v60 }
 0x120   :  { %v275_v61 = vpop.f32.mrf.mxu3 }
 0x121   :  { %v249_v62 = vpop.f32.mrf.mxu2  ;;  %v276_v63 = vadd.f32 %v275_v61, %v48_v43 }
 0x122   :  { %v250_v0 = vadd.f32 %v249_v62, %v53_v49 }
 0x123   :  { %287 = vst.msk [vmem:[#allocation6 + $0x68] sm:$0xff] %vm60_vm0, %v276_v63 }
 0x124   :  { %288 = vst [vmem:[#allocation6 + $0x70] sm:$0xff] %v250_v0 }
 0x128   :  { %v278_v1 = vpop.f32.mrf.mxu3 }
 0x129   :  { %v279_v2 = vadd.f32 %v278_v1, %v53_v49 }
 0x12b   :  { %289 = vst.msk [vmem:[#allocation6 + $0x78] sm:$0xff] %vm60_vm0, %v279_v2 }
 0x12c   :  { %302 = dma.vmem_to_hbm [thread:$0]  %s295_s7, 2048, %s297_s10, [#allocation5], %s394_s11, %s394_s11, %s395_s12  }
 0x12d   :  { %386 = dma.done.wait [#allocation5], 2048  }
 0x12e   :  { %387 = vsyncadd [#allocation5], 4294965248 }
 0x12f   :  { %307 = vsyncpa [#allocation4], 1 }
 0x130   :  { %308 = vsyncpa [#allocation5], 1 }

</bundles_post_ra>
